<compile_context>
chip_gen: v6e
topology: v6e:2x2x1
jax: 0.10.0
libtpu: 0.0.40
codegen_flags: <defaults>
</compile_context>

<pallas_src>
import functools

import jax
import jax.numpy as jnp
from jax.experimental import pallas as pl
from jax.experimental.pallas import tpu as pltpu


def _round_up(x, m):
    return ((x + m - 1) // m) * m


def _pick_tile_ho(ho, wo, target_rows):
    """Largest divisor d of ho with d*wo <= target_rows and (d*wo) % 8 == 0.

    Falls back to the whole image (block == full flat dim) instead of
    degenerating to 1-row, sublane-padded tiles.
    """
    best = None
    for d in range(1, ho + 1):
        if ho % d == 0 and d * wo <= max(target_rows, wo) and (d * wo) % 8 == 0:
            best = d
    if best is None:
        # TODO(synk): tile over flattened Ho*Wo rows with a masked remainder
        # block so prime Ho / odd Wo shapes still get ~512-row tiles.
        best = ho
    return best


def _conv_kernel(x_ref, w_ref, o_ref, acc_ref, *, kh, kw, sh, sw, tile_ho, wo):
    """One (batch, Ho-tile) grid step.

    x_ref:   (1, Hp, Wp, Cp)     spatially pre-padded image (VMEM).  Block
                                 index is constant along the tile axis, so it
                                 is DMA'd once per batch image.
    w_ref:   (KH*KW, Cp, O_pad)  packed weight, grid-constant.
    o_ref:   (1, M, O_pad)       flat output-row tile, M = tile_ho * Wo.
    acc_ref: (M, O_pad) f32      accumulator scratch.
    """
    t = pl.program_id(1)
    m = tile_ho * wo
    c = x_ref.shape[-1]
    r0 = pl.multiple_of(t * (tile_ho * sh), tile_ho * sh)

    # Direct accumulation: KH*KW matmuls (M, C) @ (C, O_pad).  No im2col patch
    # buffer -> no C-lane masked stores and no M*K_pad VMEM write+read pass.
    for i in range(kh):
        rows = (pl.ds(r0 + i, tile_ho) if sh == 1
                else pl.ds(r0 + i, tile_ho, sh))
        for j in range(kw):
            cols = pl.ds(j, wo) if sw == 1 else pl.ds(j, wo, sw)
            tap = x_ref[0, rows, cols, :]            # (tile_ho, wo, Cp) load
            tap2d = tap.reshape(m, c)                # leading-dim merge
            contrib = jnp.dot(tap2d, w_ref[i * kw + j],
                              preferred_element_type=jnp.float32)
            if i == 0 and j == 0:
                acc_ref[...] = contrib               # no zero-init pass needed
            else:
                acc_ref[...] = acc_ref[...] + contrib

    # Lane-dense flat store (O_pad >= 128 lanes); no reshape, astype is a
    # no-op when the output dtype is already f32.
    o_ref[0] = acc_ref[...].astype(o_ref.dtype)


def basic_conv2d(x_nchw, weight_ochw, *, stride, padding,
                 compute_dtype=jnp.float32, target_block_rows=512):
    """Forward pass of BasicConv2d (nn.Conv2d, bias=False).

    x_nchw:      (N, C, H, W)    input, PyTorch layout.
    weight_ochw: (O, C, KH, KW)  weight, PyTorch (OIHW) layout.
    compute_dtype: MXU operand dtype (bf16 recommended on v6e/v7x); the
                 accumulation is f32 either way.
    returns:     (N, O, Ho, Wo)  in x's dtype.
    """
    if isinstance(stride, int):
        stride = (stride, stride)
    if isinstance(padding, int):
        padding = (padding, padding)
    sh, sw = stride
    ph, pw = padding

    n, c, h, w = x_nchw.shape
    o, c2, kh, kw = weight_ochw.shape
    assert c == c2, "grouped / depthwise conv not supported"
    ho = (h + 2 * ph - kh) // sh + 1
    wo = (w + 2 * pw - kw) // sw + 1
    hp, wp = h + 2 * ph, w + 2 * pw

    # Lane-dense outputs: 128-multiples, bumped to 256-multiples above 128
    # channels so large convs map onto whole 2x256x256 MXU passes (v6e/v7x).
    o_pad = _round_up(o, 128) if o <= 128 else _round_up(o, 256)
    # Contraction dim (C): pad only to the sublane packing multiple of the
    # compute dtype (8 for f32, 16 for bf16) -- cleanly tiled matmul operands
    # without wasting MXU depth on a 128-wide zero pad.
    c_mult = max(8, 32 // jnp.dtype(compute_dtype).itemsize)
    c_pad = _round_up(c, c_mult)

    tile_ho = _pick_tile_ho(ho, wo, target_block_rows)
    n_tiles = ho // tile_ho
    m = tile_ho * wo

    # Input: NCHW -> NHWC with the spatial zero-pad and channel pad fused into
    # the one XLA copy the layout change already requires (no extra HBM pass,
    # no per-tile in-kernel pad/copy).
    # TODO(synk): keep activations NHWC end-to-end in the model so this
    # per-call NCHW<->NHWC transpose pair disappears entirely.
    x_p = jnp.pad(jnp.transpose(x_nchw, (0, 2, 3, 1)),
                  ((0, 0), (ph, ph), (pw, pw), (0, c_pad - c)))
    x_p = x_p.astype(compute_dtype)

    # Weight: (O, C, KH, KW) -> (KH*KW, Cp, O_pad), zero-padded.
    # TODO(synk): pack/pad the weight once at module init, not per call.
    w_pack = jnp.transpose(weight_ochw, (2, 3, 1, 0)).reshape(kh * kw, c, o)
    w_pack = jnp.pad(w_pack, ((0, 0), (0, c_pad - c), (0, o_pad - o)))
    w_pack = w_pack.astype(compute_dtype)

    kernel = functools.partial(_conv_kernel, kh=kh, kw=kw, sh=sh, sw=sw,
                               tile_ho=tile_ho, wo=wo)

    # VMEM budget from the actual allocations (double-buffered blocks + f32
    # accumulator) so 512-row tiles stay viable within v7x's 64 MiB.
    # TODO(synk): single-buffer the grid-constant weight / image blocks
    # (pipeline_mode) to halve their footprint for very large convs.
    in_b = jnp.dtype(compute_dtype).itemsize
    out_b = jnp.dtype(x_nchw.dtype).itemsize
    vmem_bytes = (2 * hp * wp * c_pad * in_b            # input block
                  + 2 * kh * kw * c_pad * o_pad * in_b  # weight block
                  + 2 * m * o_pad * out_b               # output block
                  + m * o_pad * 4)                      # f32 accumulator
    vmem_limit = int(min(max(1.4 * vmem_bytes + (4 << 20), 16 << 20), 128 << 20))

    out_flat = pl.pallas_call(
        kernel,
        out_shape=jax.ShapeDtypeStruct((n, ho * wo, o_pad), x_nchw.dtype),
        grid_spec=pltpu.PrefetchScalarGridSpec(
            num_scalar_prefetch=0,
            grid=(n, n_tiles),
            in_specs=[
                # Whole padded image; block index constant along the tile axis
                # -> fetched once per batch image, never re-DMA'd per tile.
                pl.BlockSpec((1, hp, wp, c_pad), lambda b, t: (b, 0, 0, 0)),
                # Packed weight, constant across the entire grid.
                pl.BlockSpec((kh * kw, c_pad, o_pad), lambda b, t: (0, 0, 0)),
            ],
            out_specs=pl.BlockSpec((1, m, o_pad), lambda b, t: (b, t, 0)),
            scratch_shapes=[pltpu.VMEM((m, o_pad), jnp.float32)],
        ),
        compiler_params=pltpu.CompilerParams(
            # No cross-step state (the accumulator is fully rewritten every
            # step), so both axes can be sharded across cores -- keeps both
            # v7x TensorCores busy even for small N.
            dimension_semantics=("parallel", "parallel"),
            vmem_limit_bytes=vmem_limit,
        ),
    )(x_p, w_pack)

    # Fold the Ho*Wo un-flatten into the O-slice + NCHW transpose (one fused
    # XLA copy under jit).
    # TODO(synk): for O << 128, a masked O-channel store in-kernel would avoid
    # the 128/O HBM write amplification of the lane-dense padded output.
    out_nhwc = out_flat[:, :, :o].reshape(n, ho, wo, o)
    return jnp.transpose(out_nhwc, (0, 3, 1, 2))


if __name__ == "__main__":
    # BasicConv2d(in_channels=4, out_channels=8, kernel_size=3, stride=1, padding=1)
    N, C, H, W = 2, 4, 16, 16
    O, KH, KW = 8, 3, 3
    STRIDE, PADDING = 1, 1

    key = jax.random.PRNGKey(0)
    kx, kw_key = jax.random.split(key)
    x = jax.random.normal(kx, (N, C, H, W), dtype=jnp.float32)
    weight = jax.random.normal(kw_key, (O, C, KH, KW), dtype=jnp.float32) * 0.1

    ref = jax.lax.conv_general_dilated(
        x, weight,
        window_strides=(STRIDE, STRIDE),
        padding=((PADDING, PADDING), (PADDING, PADDING)),
        dimension_numbers=("NCHW", "OIHW", "NCHW"),
        precision=jax.lax.Precision.HIGHEST)

    # f32 operand path; small tile target so the multi-tile path is exercised.
    conv_f32 = jax.jit(functools.partial(
        basic_conv2d, stride=STRIDE, padding=PADDING,
        compute_dtype=jnp.float32, target_block_rows=128))
    out_f32 = jax.block_until_ready(conv_f32(x, weight))
    assert out_f32.shape == ref.shape == (N, O, H, W)
    assert jnp.allclose(out_f32, ref, atol=2e-4, rtol=2e-4)

    # bf16 MXU-operand path (v6e/v7x fast path); accumulation stays f32, so
    # only the operand rounding loosens the tolerance.
    conv_bf16 = jax.jit(functools.partial(
        basic_conv2d, stride=STRIDE, padding=PADDING,
        compute_dtype=jnp.bfloat16, target_block_rows=512))
    out_bf16 = jax.block_until_ready(conv_bf16(x, weight))
    assert out_bf16.shape == ref.shape
    assert jnp.allclose(out_bf16, ref, atol=5e-2, rtol=5e-2)

    print("KERNEL_OK")
</pallas_src>

<mosaic_0001>
module attributes {stable_mosaic.version = 11 : i64} {
  func.func @_conv_kernel(%arg0: i32, %arg1: i32, %arg2: memref<1x18x18x8xf32, #tpu.memory_space<vmem>>, %arg3: memref<9x8x128xf32, #tpu.memory_space<vmem>>, %arg4: memref<1x128x128xf32, #tpu.memory_space<vmem>>, %arg5: memref<128x128xf32, #tpu.memory_space<vmem>>) attributes {dimension_semantics = [#tpu.dimension_semantics<parallel>, #tpu.dimension_semantics<parallel>], iteration_bounds = array<i64: 2, 2>, scalar_prefetch = 0 : i64, scratch_operands = 1 : i64, tpu.core_type = #tpu.core_type<tc>, window_params = [{transform_indices = @transform_0, window_bounds = array<i64: 1, 18, 18, 8>}, {pipeline_mode = #tpu.pipeline_mode<synchronous>, transform_indices = @transform_1, window_bounds = array<i64: 9, 8, 128>}, {transform_indices = @transform_2, window_bounds = array<i64: 1, 128, 128>}]} {
    %c8_i32 = arith.constant 8 : i32
    %0 = arith.muli %arg1, %c8_i32 : i32
    %1 = tpu.assume_multiple %0, 8 : i32
    %c0_i32 = arith.constant 0 : i32
    %2 = arith.addi %1, %c0_i32 : i32
    %c0 = arith.constant 0 : index
    %3 = arith.index_cast %2 : i32 to index
    %c0_0 = arith.constant 0 : index
    %c0_1 = arith.constant 0 : index
    %4 = vector.load %arg2[%c0, %3, %c0_0, %c0_1] : memref<1x18x18x8xf32, #tpu.memory_space<vmem>>, vector<1x8x16x8xf32>
    %5 = vector.shape_cast %4 : vector<1x8x16x8xf32> to vector<8x16x8xf32>
    %6 = vector.shape_cast %5 : vector<8x16x8xf32> to vector<128x8xf32>
    %c0_2 = arith.constant 0 : index
    %c0_3 = arith.constant 0 : index
    %c0_4 = arith.constant 0 : index
    %7 = vector.load %arg3[%c0_2, %c0_3, %c0_4] : memref<9x8x128xf32, #tpu.memory_space<vmem>>, vector<1x8x128xf32>
    %8 = vector.shape_cast %7 : vector<1x8x128xf32> to vector<8x128xf32>
    %cst = arith.constant dense<0.000000e+00> : vector<128x128xf32>
    %9 = tpu.matmul %6, %8, %cst {dimension_numbers = #tpu.dot_dimension_numbers<[1], [0], [0], [1], [0, 0, 1, 1], [], []>} : vector<128x8xf32>, vector<8x128xf32>, vector<128x128xf32> -> vector<128x128xf32>
    %c0_5 = arith.constant 0 : index
    %c0_6 = arith.constant 0 : index
    %10 = vector.load %arg5[%c0_5, %c0_6] : memref<128x128xf32, #tpu.memory_space<vmem>>, vector<128x128xf32>
    tpu.vector_store %arg5[%c0_5, %c0_6], %9 {strides = array<i32>} : memref<128x128xf32, #tpu.memory_space<vmem>>, vector<128x128xf32>,
    %c0_7 = arith.constant 0 : index
    %11 = arith.index_cast %2 : i32 to index
    %c1 = arith.constant 1 : index
    %c0_8 = arith.constant 0 : index
    %12 = vector.load %arg2[%c0_7, %11, %c1, %c0_8] : memref<1x18x18x8xf32, #tpu.memory_space<vmem>>, vector<1x8x16x8xf32>
    %13 = vector.shape_cast %12 : vector<1x8x16x8xf32> to vector<8x16x8xf32>
    %14 = vector.shape_cast %13 : vector<8x16x8xf32> to vector<128x8xf32>
    %c1_9 = arith.constant 1 : index
    %c0_10 = arith.constant 0 : index
    %c0_11 = arith.constant 0 : index
    %15 = vector.load %arg3[%c1_9, %c0_10, %c0_11] : memref<9x8x128xf32, #tpu.memory_space<vmem>>, vector<1x8x128xf32>
    %16 = vector.shape_cast %15 : vector<1x8x128xf32> to vector<8x128xf32>
    %cst_12 = arith.constant dense<0.000000e+00> : vector<128x128xf32>
    %17 = tpu.matmul %14, %16, %cst_12 {dimension_numbers = #tpu.dot_dimension_numbers<[1], [0], [0], [1], [0, 0, 1, 1], [], []>} : vector<128x8xf32>, vector<8x128xf32>, vector<128x128xf32> -> vector<128x128xf32>
    %c0_13 = arith.constant 0 : index
    %c0_14 = arith.constant 0 : index
    %18 = vector.load %arg5[%c0_13, %c0_14] : memref<128x128xf32, #tpu.memory_space<vmem>>, vector<128x128xf32>
    %19 = arith.addf %18, %17 : vector<128x128xf32>
    %c0_15 = arith.constant 0 : index
    %c0_16 = arith.constant 0 : index
    %20 = vector.load %arg5[%c0_15, %c0_16] : memref<128x128xf32, #tpu.memory_space<vmem>>, vector<128x128xf32>
    tpu.vector_store %arg5[%c0_15, %c0_16], %19 {strides = array<i32>} : memref<128x128xf32, #tpu.memory_space<vmem>>, vector<128x128xf32>,
    %c0_17 = arith.constant 0 : index
    %21 = arith.index_cast %2 : i32 to index
    %c2 = arith.constant 2 : index
    %c0_18 = arith.constant 0 : index
    %22 = vector.load %arg2[%c0_17, %21, %c2, %c0_18] : memref<1x18x18x8xf32, #tpu.memory_space<vmem>>, vector<1x8x16x8xf32>
    %23 = vector.shape_cast %22 : vector<1x8x16x8xf32> to vector<8x16x8xf32>
    %24 = vector.shape_cast %23 : vector<8x16x8xf32> to vector<128x8xf32>
    %c2_19 = arith.constant 2 : index
    %c0_20 = arith.constant 0 : index
    %c0_21 = arith.constant 0 : index
    %25 = vector.load %arg3[%c2_19, %c0_20, %c0_21] : memref<9x8x128xf32, #tpu.memory_space<vmem>>, vector<1x8x128xf32>
    %26 = vector.shape_cast %25 : vector<1x8x128xf32> to vector<8x128xf32>
    %cst_22 = arith.constant dense<0.000000e+00> : vector<128x128xf32>
    %27 = tpu.matmul %24, %26, %cst_22 {dimension_numbers = #tpu.dot_dimension_numbers<[1], [0], [0], [1], [0, 0, 1, 1], [], []>} : vector<128x8xf32>, vector<8x128xf32>, vector<128x128xf32> -> vector<128x128xf32>
    %c0_23 = arith.constant 0 : index
    %c0_24 = arith.constant 0 : index
    %28 = vector.load %arg5[%c0_23, %c0_24] : memref<128x128xf32, #tpu.memory_space<vmem>>, vector<128x128xf32>
    %29 = arith.addf %28, %27 : vector<128x128xf32>
    %c0_25 = arith.constant 0 : index
    %c0_26 = arith.constant 0 : index
    %30 = vector.load %arg5[%c0_25, %c0_26] : memref<128x128xf32, #tpu.memory_space<vmem>>, vector<128x128xf32>
    tpu.vector_store %arg5[%c0_25, %c0_26], %29 {strides = array<i32>} : memref<128x128xf32, #tpu.memory_space<vmem>>, vector<128x128xf32>,
    %c1_i32 = arith.constant 1 : i32
    %31 = arith.addi %1, %c1_i32 : i32
    %c0_27 = arith.constant 0 : index
    %32 = arith.index_cast %31 : i32 to index
    %c0_28 = arith.constant 0 : index
    %c0_29 = arith.constant 0 : index
    %33 = vector.load %arg2[%c0_27, %32, %c0_28, %c0_29] : memref<1x18x18x8xf32, #tpu.memory_space<vmem>>, vector<1x8x16x8xf32>
    %34 = vector.shape_cast %33 : vector<1x8x16x8xf32> to vector<8x16x8xf32>
    %35 = vector.shape_cast %34 : vector<8x16x8xf32> to vector<128x8xf32>
    %c3 = arith.constant 3 : index
    %c0_30 = arith.constant 0 : index
    %c0_31 = arith.constant 0 : index
    %36 = vector.load %arg3[%c3, %c0_30, %c0_31] : memref<9x8x128xf32, #tpu.memory_space<vmem>>, vector<1x8x128xf32>
    %37 = vector.shape_cast %36 : vector<1x8x128xf32> to vector<8x128xf32>
    %cst_32 = arith.constant dense<0.000000e+00> : vector<128x128xf32>
    %38 = tpu.matmul %35, %37, %cst_32 {dimension_numbers = #tpu.dot_dimension_numbers<[1], [0], [0], [1], [0, 0, 1, 1], [], []>} : vector<128x8xf32>, vector<8x128xf32>, vector<128x128xf32> -> vector<128x128xf32>
    %c0_33 = arith.constant 0 : index
    %c0_34 = arith.constant 0 : index
    %39 = vector.load %arg5[%c0_33, %c0_34] : memref<128x128xf32, #tpu.memory_space<vmem>>, vector<128x128xf32>
    %40 = arith.addf %39, %38 : vector<128x128xf32>
    %c0_35 = arith.constant 0 : index
    %c0_36 = arith.constant 0 : index
    %41 = vector.load %arg5[%c0_35, %c0_36] : memref<128x128xf32, #tpu.memory_space<vmem>>, vector<128x128xf32>
    tpu.vector_store %arg5[%c0_35, %c0_36], %40 {strides = array<i32>} : memref<128x128xf32, #tpu.memory_space<vmem>>, vector<128x128xf32>,
    %c0_37 = arith.constant 0 : index
    %42 = arith.index_cast %31 : i32 to index
    %c1_38 = arith.constant 1 : index
    %c0_39 = arith.constant 0 : index
    %43 = vector.load %arg2[%c0_37, %42, %c1_38, %c0_39] : memref<1x18x18x8xf32, #tpu.memory_space<vmem>>, vector<1x8x16x8xf32>
    %44 = vector.shape_cast %43 : vector<1x8x16x8xf32> to vector<8x16x8xf32>
    %45 = vector.shape_cast %44 : vector<8x16x8xf32> to vector<128x8xf32>
    %c4 = arith.constant 4 : index
    %c0_40 = arith.constant 0 : index
    %c0_41 = arith.constant 0 : index
    %46 = vector.load %arg3[%c4, %c0_40, %c0_41] : memref<9x8x128xf32, #tpu.memory_space<vmem>>, vector<1x8x128xf32>
    %47 = vector.shape_cast %46 : vector<1x8x128xf32> to vector<8x128xf32>
    %cst_42 = arith.constant dense<0.000000e+00> : vector<128x128xf32>
    %48 = tpu.matmul %45, %47, %cst_42 {dimension_numbers = #tpu.dot_dimension_numbers<[1], [0], [0], [1], [0, 0, 1, 1], [], []>} : vector<128x8xf32>, vector<8x128xf32>, vector<128x128xf32> -> vector<128x128xf32>
    %c0_43 = arith.constant 0 : index
    %c0_44 = arith.constant 0 : index
    %49 = vector.load %arg5[%c0_43, %c0_44] : memref<128x128xf32, #tpu.memory_space<vmem>>, vector<128x128xf32>
    %50 = arith.addf %49, %48 : vector<128x128xf32>
    %c0_45 = arith.constant 0 : index
    %c0_46 = arith.constant 0 : index
    %51 = vector.load %arg5[%c0_45, %c0_46] : memref<128x128xf32, #tpu.memory_space<vmem>>, vector<128x128xf32>
    tpu.vector_store %arg5[%c0_45, %c0_46], %50 {strides = array<i32>} : memref<128x128xf32, #tpu.memory_space<vmem>>, vector<128x128xf32>,
    %c0_47 = arith.constant 0 : index
    %52 = arith.index_cast %31 : i32 to index
    %c2_48 = arith.constant 2 : index
    %c0_49 = arith.constant 0 : index
    %53 = vector.load %arg2[%c0_47, %52, %c2_48, %c0_49] : memref<1x18x18x8xf32, #tpu.memory_space<vmem>>, vector<1x8x16x8xf32>
    %54 = vector.shape_cast %53 : vector<1x8x16x8xf32> to vector<8x16x8xf32>
    %55 = vector.shape_cast %54 : vector<8x16x8xf32> to vector<128x8xf32>
    %c5 = arith.constant 5 : index
    %c0_50 = arith.constant 0 : index
    %c0_51 = arith.constant 0 : index
    %56 = vector.load %arg3[%c5, %c0_50, %c0_51] : memref<9x8x128xf32, #tpu.memory_space<vmem>>, vector<1x8x128xf32>
    %57 = vector.shape_cast %56 : vector<1x8x128xf32> to vector<8x128xf32>
    %cst_52 = arith.constant dense<0.000000e+00> : vector<128x128xf32>
    %58 = tpu.matmul %55, %57, %cst_52 {dimension_numbers = #tpu.dot_dimension_numbers<[1], [0], [0], [1], [0, 0, 1, 1], [], []>} : vector<128x8xf32>, vector<8x128xf32>, vector<128x128xf32> -> vector<128x128xf32>
    %c0_53 = arith.constant 0 : index
    %c0_54 = arith.constant 0 : index
    %59 = vector.load %arg5[%c0_53, %c0_54] : memref<128x128xf32, #tpu.memory_space<vmem>>, vector<128x128xf32>
    %60 = arith.addf %59, %58 : vector<128x128xf32>
    %c0_55 = arith.constant 0 : index
    %c0_56 = arith.constant 0 : index
    %61 = vector.load %arg5[%c0_55, %c0_56] : memref<128x128xf32, #tpu.memory_space<vmem>>, vector<128x128xf32>
    tpu.vector_store %arg5[%c0_55, %c0_56], %60 {strides = array<i32>} : memref<128x128xf32, #tpu.memory_space<vmem>>, vector<128x128xf32>,
    %c2_i32 = arith.constant 2 : i32
    %62 = arith.addi %1, %c2_i32 : i32
    %c0_57 = arith.constant 0 : index
    %63 = arith.index_cast %62 : i32 to index
    %c0_58 = arith.constant 0 : index
    %c0_59 = arith.constant 0 : index
    %64 = vector.load %arg2[%c0_57, %63, %c0_58, %c0_59] : memref<1x18x18x8xf32, #tpu.memory_space<vmem>>, vector<1x8x16x8xf32>
    %65 = vector.shape_cast %64 : vector<1x8x16x8xf32> to vector<8x16x8xf32>
    %66 = vector.shape_cast %65 : vector<8x16x8xf32> to vector<128x8xf32>
    %c6 = arith.constant 6 : index
    %c0_60 = arith.constant 0 : index
    %c0_61 = arith.constant 0 : index
    %67 = vector.load %arg3[%c6, %c0_60, %c0_61] : memref<9x8x128xf32, #tpu.memory_space<vmem>>, vector<1x8x128xf32>
    %68 = vector.shape_cast %67 : vector<1x8x128xf32> to vector<8x128xf32>
    %cst_62 = arith.constant dense<0.000000e+00> : vector<128x128xf32>
    %69 = tpu.matmul %66, %68, %cst_62 {dimension_numbers = #tpu.dot_dimension_numbers<[1], [0], [0], [1], [0, 0, 1, 1], [], []>} : vector<128x8xf32>, vector<8x128xf32>, vector<128x128xf32> -> vector<128x128xf32>
    %c0_63 = arith.constant 0 : index
    %c0_64 = arith.constant 0 : index
    %70 = vector.load %arg5[%c0_63, %c0_64] : memref<128x128xf32, #tpu.memory_space<vmem>>, vector<128x128xf32>
    %71 = arith.addf %70, %69 : vector<128x128xf32>
    %c0_65 = arith.constant 0 : index
    %c0_66 = arith.constant 0 : index
    %72 = vector.load %arg5[%c0_65, %c0_66] : memref<128x128xf32, #tpu.memory_space<vmem>>, vector<128x128xf32>
    tpu.vector_store %arg5[%c0_65, %c0_66], %71 {strides = array<i32>} : memref<128x128xf32, #tpu.memory_space<vmem>>, vector<128x128xf32>,
    %c0_67 = arith.constant 0 : index
    %73 = arith.index_cast %62 : i32 to index
    %c1_68 = arith.constant 1 : index
    %c0_69 = arith.constant 0 : index
    %74 = vector.load %arg2[%c0_67, %73, %c1_68, %c0_69] : memref<1x18x18x8xf32, #tpu.memory_space<vmem>>, vector<1x8x16x8xf32>
    %75 = vector.shape_cast %74 : vector<1x8x16x8xf32> to vector<8x16x8xf32>
    %76 = vector.shape_cast %75 : vector<8x16x8xf32> to vector<128x8xf32>
    %c7 = arith.constant 7 : index
    %c0_70 = arith.constant 0 : index
    %c0_71 = arith.constant 0 : index
    %77 = vector.load %arg3[%c7, %c0_70, %c0_71] : memref<9x8x128xf32, #tpu.memory_space<vmem>>, vector<1x8x128xf32>
    %78 = vector.shape_cast %77 : vector<1x8x128xf32> to vector<8x128xf32>
    %cst_72 = arith.constant dense<0.000000e+00> : vector<128x128xf32>
    %79 = tpu.matmul %76, %78, %cst_72 {dimension_numbers = #tpu.dot_dimension_numbers<[1], [0], [0], [1], [0, 0, 1, 1], [], []>} : vector<128x8xf32>, vector<8x128xf32>, vector<128x128xf32> -> vector<128x128xf32>
    %c0_73 = arith.constant 0 : index
    %c0_74 = arith.constant 0 : index
    %80 = vector.load %arg5[%c0_73, %c0_74] : memref<128x128xf32, #tpu.memory_space<vmem>>, vector<128x128xf32>
    %81 = arith.addf %80, %79 : vector<128x128xf32>
    %c0_75 = arith.constant 0 : index
    %c0_76 = arith.constant 0 : index
    %82 = vector.load %arg5[%c0_75, %c0_76] : memref<128x128xf32, #tpu.memory_space<vmem>>, vector<128x128xf32>
    tpu.vector_store %arg5[%c0_75, %c0_76], %81 {strides = array<i32>} : memref<128x128xf32, #tpu.memory_space<vmem>>, vector<128x128xf32>,
    %c0_77 = arith.constant 0 : index
    %83 = arith.index_cast %62 : i32 to index
    %c2_78 = arith.constant 2 : index
    %c0_79 = arith.constant 0 : index
    %84 = vector.load %arg2[%c0_77, %83, %c2_78, %c0_79] : memref<1x18x18x8xf32, #tpu.memory_space<vmem>>, vector<1x8x16x8xf32>
    %85 = vector.shape_cast %84 : vector<1x8x16x8xf32> to vector<8x16x8xf32>
    %86 = vector.shape_cast %85 : vector<8x16x8xf32> to vector<128x8xf32>
    %c8 = arith.constant 8 : index
    %c0_80 = arith.constant 0 : index
    %c0_81 = arith.constant 0 : index
    %87 = vector.load %arg3[%c8, %c0_80, %c0_81] : memref<9x8x128xf32, #tpu.memory_space<vmem>>, vector<1x8x128xf32>
    %88 = vector.shape_cast %87 : vector<1x8x128xf32> to vector<8x128xf32>
    %cst_82 = arith.constant dense<0.000000e+00> : vector<128x128xf32>
    %89 = tpu.matmul %86, %88, %cst_82 {dimension_numbers = #tpu.dot_dimension_numbers<[1], [0], [0], [1], [0, 0, 1, 1], [], []>} : vector<128x8xf32>, vector<8x128xf32>, vector<128x128xf32> -> vector<128x128xf32>
    %c0_83 = arith.constant 0 : index
    %c0_84 = arith.constant 0 : index
    %90 = vector.load %arg5[%c0_83, %c0_84] : memref<128x128xf32, #tpu.memory_space<vmem>>, vector<128x128xf32>
    %91 = arith.addf %90, %89 : vector<128x128xf32>
    %c0_85 = arith.constant 0 : index
    %c0_86 = arith.constant 0 : index
    %92 = vector.load %arg5[%c0_85, %c0_86] : memref<128x128xf32, #tpu.memory_space<vmem>>, vector<128x128xf32>
    tpu.vector_store %arg5[%c0_85, %c0_86], %91 {strides = array<i32>} : memref<128x128xf32, #tpu.memory_space<vmem>>, vector<128x128xf32>,
    %c0_87 = arith.constant 0 : index
    %c0_88 = arith.constant 0 : index
    %93 = vector.load %arg5[%c0_87, %c0_88] : memref<128x128xf32, #tpu.memory_space<vmem>>, vector<128x128xf32>
    %c0_89 = arith.constant 0 : index
    %c0_90 = arith.constant 0 : index
    %c0_91 = arith.constant 0 : index
    %94 = vector.load %arg4[%c0_89, %c0_90, %c0_91] : memref<1x128x128xf32, #tpu.memory_space<vmem>>, vector<1x128x128xf32>
    %95 = vector.shape_cast %94 : vector<1x128x128xf32> to vector<128x128xf32>
    %96 = vector.shape_cast %93 : vector<128x128xf32> to vector<1x128x128xf32>
    tpu.vector_store %arg4[%c0_89, %c0_90, %c0_91], %96 {strides = array<i32>} : memref<1x128x128xf32, #tpu.memory_space<vmem>>, vector<1x128x128xf32>,
    return
  }
  func.func @transform_0(%arg0: i32, %arg1: i32) -> (i32, i32, i32, i32) {
    %c0_i32 = arith.constant 0 : i32
    %c0_i32_0 = arith.constant 0 : i32
    %c0_i32_1 = arith.constant 0 : i32
    %c0_i32_2 = arith.constant 0 : i32
    return %arg0, %c0_i32, %c0_i32_0, %c0_i32_1 : i32, i32, i32, i32
  }
  func.func @transform_1(%arg0: i32, %arg1: i32) -> (i32, i32, i32) {
    %c0_i32 = arith.constant 0 : i32
    %c0_i32_0 = arith.constant 0 : i32
    %c0_i32_1 = arith.constant 0 : i32
    %c0_i32_2 = arith.constant 0 : i32
    return %c0_i32, %c0_i32_0, %c0_i32_1 : i32, i32, i32
  }
  func.func @transform_2(%arg0: i32, %arg1: i32) -> (i32, i32, i32) {
    %c0_i32 = arith.constant 0 : i32
    %c0_i32_0 = arith.constant 0 : i32
    return %arg0, %arg1, %c0_i32 : i32, i32, i32
  }
}

</mosaic_0001>

<bundles_post_ra>
// kernel: basic_conv2d.1
= control target key start
LH: loop header
LB: loop body
LE: loop exit
PB: predicated region body
PF: predicated region fallthrough
CT: control target
= control target key end

     0   :  { %s3351_s9 = smov 0   ;;  %s3353_s10 = smov 0   ;;  %s4087_s0 = inlined_call_operand.vmem [shape: f32[2,18,18,8], index: 0, kind: input, shape index: {}]   ;;  %s4088_s1 = inlined_call_operand.vmem [shape: f32[9,8,128], index: 1, kind: input, shape index: {}]   ;;  %s4089_s2 = inlined_call_operand.vmem [shape: f32[2,256,128], index: 2, kind: output, shape index: {}]  }
   0x1   :  { %s3355_s11 = smov 0   ;;  %s3357_s12 = smov 0  }
   0x2   :  { %s3359_s13 = smov 0  }
   0x3 LB: > { %s21_s14 = sadd.s32 1, %s3326_s11  ;;  %s24_s15 = sadd.s32 1, %s3330_s12  ;;  %s3334_s13 = sphi %s3359_s13, %s12_s13   ;;  %s3330_s12 = sphi %s3357_s12, %s4129_s12   ;;  %s3326_s11 = sphi %s3355_s11, %s4128_s11   ;;  %s3322_s10 = sphi %s3353_s10, %s4127_s10   ;;  %s3318_s9 = sphi %s3351_s9, %s4126_s9  }
   0x4   : > { %p22_p0 = scmp.ge.s32.totalorder %s21_s14, 2  ;;  %p2605_p1 = scmp.ge.s32.totalorder %s3334_s13, 1 }
   0x5   : > { %p126_p2 = scmp.lt.s32.totalorder %s3334_s13, 5 }
   0x6   : > { %s4131_s14 = smov (%p22_p0, %s21_s14), 0  ;;  %s4133_s15 = smov (!%p22_p0, %s24_s15), %s3330_s12 }
   0x7   : > { %p127_p3 = pnand %p2605_p1, %p126_p2  ;;  %p26_p4 = scmp.ge.s32.totalorder %s4133_s15, 2 }
   0x9   : > { %s4135_s15 = smov (%p26_p4, %s4133_s15), 0  ;;  %130 = sbr.rel (%p127_p3) target bundleno = 364 (0x16c), region = 28 }
   0xe   : > { %v186_v0 = vld [vmem:[%s4088_s1] sm:$0xff]  ;;  %p152_p5 = scmp.lt.s32.totalorder %s3322_s10, 1  ;;  %v2628_v1 = vld [vmem:[%s4088_s1 + $0x8] sm:$0xff]  ;;  %v2645_v2 = vld [vmem:[%s4088_s1 + $0x10] sm:$0xff]  ;;  %s2611_s22 = smul.u32 192, %s3318_s9  ;;  %vm187_vm0 = vcmask 64512  }
   0xf   : > { %3253 = vmatprep.subr.mxu1 %v186_v0  ;;  %3019 = vmatprep.subr.mxu0 %v186_v0  ;;  %v2680_v9 = vld [vmem:[%s4088_s1 + $0x18] sm:$0xff]  ;;  %v2713_v10 = vld [vmem:[%s4088_s1 + $0x20] sm:$0xff]  ;;  %v3498_v27 = vld [vmem:[%s4088_s1 + $0x28] sm:$0xff]  ;;  %s2607_s19 = sshll.u32 %s3318_s9, 4 }
  0x10   : > { %3254 = vmatpush3.msra.mxu1 %v186_v0  ;;  %3020 = vmatpush3.msra.mxu0 %v186_v0  ;;  %s4137_s10 = smov (!%p152_p5, %s3322_s10), 1  ;;  %v3503_v28 = vld [vmem:[%s4088_s1 + $0x30] sm:$0xff]  ;;  %v2814_v55 = vld [vmem:[%s4088_s1 + $0x38] sm:$0xff]  ;;  %v2847_v56 = vld [vmem:[%s4088_s1 + $0x40] sm:$0xff]  ;;  %p160_p6 = scmp.lt.s32.totalorder %s2607_s19, 31 }
  0x11   : > { %3045 = vmatprep.subr.mxu1 %v2628_v1  ;;  %3071 = vmatprep.subr.mxu0 %v2645_v2  ;;  %s3255_s23 = smul.u32 432, %s4137_s10  ;;  %s2608_s9 = sshll.u32 %s4137_s10, 5 }
  0x12   : > { %s4139_s19 = smov (!%p160_p6, %s2607_s19), 31 }
  0x13   : > { %s156_s26 = scalar_lea.vmem %s4087_s0, %s3255_s23  ;;  %s163_s20 = sadd.s32 %s2608_s9, %s4139_s19 }
  0x14   : > { %s3399_s27 = scalar_lea.vmem %s156_s26, %s2611_s22  ;;  %s2609_s10 = sshll.u32 %s163_s20, 3 }
  0x15   : > { %v170_v3 = vld [vmem:[%s3399_s27] sm:$0xff]  ;;  %v171_v5 = vld [vmem:[%s3399_s27 + $0x8] sm:$0xff]  ;;  %v3413_v7 = vld [vmem:[%s3399_s27 + $0x18] sm:$0xff]  ;;  %s4004_s23 = scalar_lea.vmem %s4089_s2, %s2609_s10 }
  0x16   : > { %v3403_v4 = vld [vmem:[%s3399_s27 + $0x60] sm:$0xff]  ;;  %3021 = vmatprep.mubr.msk.f32.mxu0 %vm187_vm0, %v170_v3  ;;  %v3410_v6 = vld [vmem:[%s3399_s27 + $0x68] sm:$0xff]  ;;  %v3416_v8 = vld [vmem:[%s3399_s27 + $0x78] sm:$0xff] }
  0x17   : > { %3033 = vmatprep.mubr.msk.f32.mxu1 %vm187_vm0, %v3403_v4  ;;  %3022 = vmatmul.mubr.msk.f32.vlgmr.msra.gmra.mxu0 %vm187_vm0, %v171_v5  ;;  %v3428_v11 = vld [vmem:[%s3399_s27 + $0x20] sm:$0xff]  ;;  %v3438_v13 = vld [vmem:[%s3399_s27 + $0x30] sm:$0xff]  ;;  %v3452_v15 = vld [vmem:[%s3399_s27 + $0x38] sm:$0xff] }
  0x18   : > { %3034 = vmatmul.mubr.msk.f32.vlgmr.msra.gmra.mxu1 %vm187_vm0, %v3410_v6  ;;  %3072 = vmatpush3.msra.mxu0 %v2645_v2  ;;  %v3431_v12 = vld [vmem:[%s3399_s27 + $0x80] sm:$0xff]  ;;  %v3441_v14 = vld [vmem:[%s3399_s27 + $0x90] sm:$0xff]  ;;  %v3455_v16 = vld [vmem:[%s3399_s27 + $0x98] sm:$0xff] }
  0x19   : > { %3046 = vmatpush3.msra.mxu1 %v2628_v1  ;;  %3024 = vmatprep.mubr.msk.f32.mxu0 %vm187_vm0, %v3413_v7  ;;  %v3458_v17 = vld [vmem:[%s3399_s27 + $0x48] sm:$0xff]  ;;  %v3472_v19 = vld [vmem:[%s3399_s27 + $0x50] sm:$0xff]  ;;  %v3488_v25 = vld [vmem:[%s3399_s27 + $0x19] sm:$0xff] }
  0x1a   : > { %3036 = vmatprep.mubr.msk.f32.mxu1 %vm187_vm0, %v3416_v8  ;;  %3097 = vmatprep.subr.mxu1 %v2680_v9  ;;  %v3461_v18 = vld [vmem:[%s3399_s27 + $0xa8] sm:$0xff]  ;;  %v3475_v20 = vld [vmem:[%s3399_s27 + $0xb0] sm:$0xff]  ;;  %v3491_v26 = vld [vmem:[%s3399_s27 + $0x1a] sm:$0xff] }
  0x1b   : > { %3123 = vmatprep.subr.mxu0 %v2713_v10  ;;  %3025 = vmatmul.mubr.msk.f32.gmra.mxu0 %vm187_vm0, %v3428_v11  ;;  %v397_v21 = vld [vmem:[%s3399_s27 + $0x1] sm:$0xff]  ;;  %v398_v23 = vld [vmem:[%s3399_s27 + $0x9] sm:$0xff]  ;;  %v3514_v31 = vld [vmem:[%s3399_s27 + $0x31] sm:$0xff] }
  0x1c   : > { %3037 = vmatmul.mubr.msk.f32.gmra.mxu1 %vm187_vm0, %v3431_v12  ;;  %3027 = vmatprep.mubr.msk.f32.mxu0 %vm187_vm0, %v3438_v13  ;;  %v656_v22 = vld [vmem:[%s3399_s27 + $0x2] sm:$0xff]  ;;  %v657_v24 = vld [vmem:[%s3399_s27 + $0xa] sm:$0xff]  ;;  %v3517_v32 = vld [vmem:[%s3399_s27 + $0x32] sm:$0xff] }
  0x1d   : > { %3039 = vmatprep.mubr.msk.f32.mxu1 %vm187_vm0, %v3441_v14  ;;  %v400_v29 = vld [vmem:[%s3399_s27 + $0x21] sm:$0xff]  ;;  %v3529_v33 = vld [vmem:[%s3399_s27 + $0x39] sm:$0xff]  ;;  %v3535_v35 = vld [vmem:[%s3399_s27 + $0x49] sm:$0xff] }
  0x1e   : > { %v3507_v30 = vld [vmem:[%s3399_s27 + $0x22] sm:$0xff]  ;;  %v3532_v34 = vld [vmem:[%s3399_s27 + $0x3a] sm:$0xff]  ;;  %v3538_v36 = vld [vmem:[%s3399_s27 + $0x4a] sm:$0xff] }
  0x1f   : > { %3028 = vmatmul.mubr.msk.f32.gmra.mxu0 %vm187_vm0, %v3452_v15  ;;  %v3549_v37 = vld [vmem:[%s3399_s27 + $0x51] sm:$0xff]  ;;  %v3555_v39 = vld [vmem:[%s3399_s27 + $0x61] sm:$0xff]  ;;  %v3569_v41 = vld [vmem:[%s3399_s27 + $0x69] sm:$0xff] }
  0x20   : > { %3040 = vmatmul.mubr.msk.f32.gmra.mxu1 %vm187_vm0, %v3455_v16  ;;  %3030 = vmatprep.mubr.msk.f32.mxu0 %vm187_vm0, %v3458_v17  ;;  %v3552_v38 = vld [vmem:[%s3399_s27 + $0x52] sm:$0xff]  ;;  %v3558_v40 = vld [vmem:[%s3399_s27 + $0x62] sm:$0xff]  ;;  %v3572_v42 = vld [vmem:[%s3399_s27 + $0x6a] sm:$0xff] }
  0x21   : > { %3042 = vmatprep.mubr.msk.f32.mxu1 %vm187_vm0, %v3461_v18  ;;  %v3575_v43 = vld [vmem:[%s3399_s27 + $0x79] sm:$0xff]  ;;  %v3589_v45 = vld [vmem:[%s3399_s27 + $0x81] sm:$0xff]  ;;  %v3595_v47 = vld [vmem:[%s3399_s27 + $0x91] sm:$0xff] }
  0x22   : > { %v3578_v44 = vld [vmem:[%s3399_s27 + $0x7a] sm:$0xff]  ;;  %v3592_v46 = vld [vmem:[%s3399_s27 + $0x82] sm:$0xff]  ;;  %v3598_v48 = vld [vmem:[%s3399_s27 + $0x92] sm:$0xff] }
  0x23   : > { %3031 = vmatmul.mubr.msk.f32.gmra.mxu0 %vm187_vm0, %v3472_v19  ;;  %v3609_v49 = vld [vmem:[%s3399_s27 + $0x99] sm:$0xff]  ;;  %v3615_v51 = vld [vmem:[%s3399_s27 + $0xa9] sm:$0xff]  ;;  %v3629_v53 = vld [vmem:[%s3399_s27 + $0xb1] sm:$0xff] }
  0x24   : > { %3043 = vmatmul.mubr.msk.f32.gmra.mxu1 %vm187_vm0, %v3475_v20  ;;  %3073 = vmatprep.mubr.msk.f32.mxu0 %vm187_vm0, %v656_v22  ;;  %v3612_v50 = vld [vmem:[%s3399_s27 + $0x9a] sm:$0xff]  ;;  %v3618_v52 = vld [vmem:[%s3399_s27 + $0xaa] sm:$0xff]  ;;  %v3632_v54 = vld [vmem:[%s3399_s27 + $0xb2] sm:$0xff] }
  0x25   : > { %3047 = vmatprep.mubr.msk.f32.mxu1 %vm187_vm0, %v397_v21  ;;  %v2678_v57 = vld [vmem:[%s3399_s27 + $0xc0] sm:$0xff]  ;;  %v2679_v59 = vld [vmem:[%s3399_s27 + $0xc8] sm:$0xff]  ;;  %v2779_v62 = vld [vmem:[%s3399_s27 + $0xd8] sm:$0xff] }
  0x26   : > { %v3699_v58 = vld [vmem:[%s3399_s27 + $0xc1] sm:$0xff]  ;;  %v3710_v60 = vld [vmem:[%s3399_s27 + $0xc9] sm:$0xff]  ;;  %v2812_v1 = vld [vmem:[%s3399_s27 + $0xd9] sm:$0xff] }
  0x27   : > { %3074 = vmatmul.mubr.msk.f32.vlgmr.msra.gmra.mxu0 %vm187_vm0, %v657_v24  ;;  %v2744_v61 = vld [vmem:[%s3399_s27 + $0xc2] sm:$0xff]  ;;  %v2745_v63 = vld [vmem:[%s3399_s27 + $0xca] sm:$0xff]  ;;  %v2845_v2 = vld [vmem:[%s3399_s27 + $0xda] sm:$0xff] }
  0x28   : > { %3048 = vmatmul.mubr.msk.f32.vlgmr.msra.gmra.mxu1 %vm187_vm0, %v398_v23  ;;  %3124 = vmatpush3.msra.mxu0 %v2713_v10  ;;  %v2780_v0 = vld [vmem:[%s3399_s27 + $0xe0] sm:$0xff] }
  0x29   : > { %3098 = vmatpush3.msra.mxu1 %v2680_v9  ;;  %3050 = vmatprep.mubr.msk.f32.mxu1 %vm187_vm0, %v3488_v25  ;;  %v2813_v3 = vld [vmem:[%s3399_s27 + $0xe1] sm:$0xff] }
  0x2a   : > { %3076 = vmatprep.mubr.msk.f32.mxu0 %vm187_vm0, %v3491_v26  ;;  %3149 = vmatprep.subr.mxu1 %v3498_v27 }
  0x2b   : > { %3175 = vmatprep.subr.mxu0 %v3503_v28  ;;  %3077 = vmatmul.mubr.msk.f32.gmra.mxu0 %vm187_vm0, %v3507_v30 }
  0x2c   : > { %3051 = vmatmul.mubr.msk.f32.gmra.mxu1 %vm187_vm0, %v400_v29  ;;  %3079 = vmatprep.mubr.msk.f32.mxu0 %vm187_vm0, %v3517_v32 }
  0x2d   : > { %3053 = vmatprep.mubr.msk.f32.mxu1 %vm187_vm0, %v3514_v31 }
  0x2f   : > { %3080 = vmatmul.mubr.msk.f32.gmra.mxu0 %vm187_vm0, %v3532_v34 }
  0x30   : > { %3054 = vmatmul.mubr.msk.f32.gmra.mxu1 %vm187_vm0, %v3529_v33  ;;  %3082 = vmatprep.mubr.msk.f32.mxu0 %vm187_vm0, %v3538_v36 }
  0x31   : > { %3056 = vmatprep.mubr.msk.f32.mxu1 %vm187_vm0, %v3535_v35 }
  0x33   : > { %3083 = vmatmul.mubr.msk.f32.gmra.mxu0 %vm187_vm0, %v3552_v38 }
  0x34   : > { %3057 = vmatmul.mubr.msk.f32.gmra.mxu1 %vm187_vm0, %v3549_v37  ;;  %3085 = vmatprep.mubr.msk.f32.mxu0 %vm187_vm0, %v3558_v40 }
  0x35   : > { %3059 = vmatprep.mubr.msk.f32.mxu1 %vm187_vm0, %v3555_v39 }
  0x37   : > { %3086 = vmatmul.mubr.msk.f32.gmra.mxu0 %vm187_vm0, %v3572_v42 }
  0x38   : > { %3060 = vmatmul.mubr.msk.f32.gmra.mxu1 %vm187_vm0, %v3569_v41  ;;  %3088 = vmatprep.mubr.msk.f32.mxu0 %vm187_vm0, %v3578_v44 }
  0x39   : > { %3062 = vmatprep.mubr.msk.f32.mxu1 %vm187_vm0, %v3575_v43 }
  0x3b   : > { %3089 = vmatmul.mubr.msk.f32.gmra.mxu0 %vm187_vm0, %v3592_v46 }
  0x3c   : > { %3063 = vmatmul.mubr.msk.f32.gmra.mxu1 %vm187_vm0, %v3589_v45  ;;  %3091 = vmatprep.mubr.msk.f32.mxu0 %vm187_vm0, %v3598_v48 }
  0x3d   : > { %3065 = vmatprep.mubr.msk.f32.mxu1 %vm187_vm0, %v3595_v47 }
  0x3f   : > { %3092 = vmatmul.mubr.msk.f32.gmra.mxu0 %vm187_vm0, %v3612_v50 }
  0x40   : > { %3066 = vmatmul.mubr.msk.f32.gmra.mxu1 %vm187_vm0, %v3609_v49  ;;  %3094 = vmatprep.mubr.msk.f32.mxu0 %vm187_vm0, %v3618_v52 }
  0x41   : > { %3068 = vmatprep.mubr.msk.f32.mxu1 %vm187_vm0, %v3615_v51 }
  0x43   : > { %3095 = vmatmul.mubr.msk.f32.gmra.mxu0 %vm187_vm0, %v3632_v54 }
  0x44   : > { %3069 = vmatmul.mubr.msk.f32.gmra.mxu1 %vm187_vm0, %v3629_v53  ;;  %3125 = vmatprep.mubr.msk.f32.mxu0 %vm187_vm0, %v3488_v25 }
  0x45   : > { %3099 = vmatprep.mubr.msk.f32.mxu1 %vm187_vm0, %v3413_v7 }
  0x47   : > { %3126 = vmatmul.mubr.msk.f32.vlgmr.msra.gmra.mxu0 %vm187_vm0, %v400_v29 }
  0x48   : > { %3100 = vmatmul.mubr.msk.f32.vlgmr.msra.gmra.mxu1 %vm187_vm0, %v3428_v11  ;;  %3176 = vmatpush3.msra.mxu0 %v3503_v28 }
  0x49   : > { %3150 = vmatpush3.msra.mxu1 %v3498_v27  ;;  %3102 = vmatprep.mubr.msk.f32.mxu1 %vm187_vm0, %v3438_v13 }
  0x4a   : > { %3128 = vmatprep.mubr.msk.f32.mxu0 %vm187_vm0, %v3514_v31  ;;  %3201 = vmatprep.subr.mxu1 %v2814_v55 }
  0x4b   : > { %3227 = vmatprep.subr.mxu0 %v2847_v56  ;;  %3129 = vmatmul.mubr.msk.f32.gmra.mxu0 %vm187_vm0, %v3529_v33 }
  0x4c   : > { %3103 = vmatmul.mubr.msk.f32.gmra.mxu1 %vm187_vm0, %v3452_v15  ;;  %3131 = vmatprep.mubr.msk.f32.mxu0 %vm187_vm0, %v3535_v35 }
  0x4d   : > { %3105 = vmatprep.mubr.msk.f32.mxu1 %vm187_vm0, %v3458_v17 }
  0x4f   : > { %3132 = vmatmul.mubr.msk.f32.gmra.mxu0 %vm187_vm0, %v3549_v37 }
  0x50   : > { %3106 = vmatmul.mubr.msk.f32.gmra.mxu1 %vm187_vm0, %v3472_v19  ;;  %3134 = vmatprep.mubr.msk.f32.mxu0 %vm187_vm0, %v3555_v39 }
  0x51   : > { %3108 = vmatprep.mubr.msk.f32.mxu1 %vm187_vm0, %v3403_v4 }
  0x53   : > { %3135 = vmatmul.mubr.msk.f32.gmra.mxu0 %vm187_vm0, %v3569_v41 }
  0x54   : > { %3109 = vmatmul.mubr.msk.f32.gmra.mxu1 %vm187_vm0, %v3410_v6  ;;  %3137 = vmatprep.mubr.msk.f32.mxu0 %vm187_vm0, %v3575_v43 }
  0x55   : > { %3111 = vmatprep.mubr.msk.f32.mxu1 %vm187_vm0, %v3416_v8 }
  0x57   : > { %3138 = vmatmul.mubr.msk.f32.gmra.mxu0 %vm187_vm0, %v3589_v45 }
  0x58   : > { %3112 = vmatmul.mubr.msk.f32.gmra.mxu1 %vm187_vm0, %v3431_v12  ;;  %3140 = vmatprep.mubr.msk.f32.mxu0 %vm187_vm0, %v3595_v47 }
  0x59   : > { %3114 = vmatprep.mubr.msk.f32.mxu1 %vm187_vm0, %v3441_v14 }
  0x5b   : > { %3141 = vmatmul.mubr.msk.f32.gmra.mxu0 %vm187_vm0, %v3609_v49 }
  0x5c   : > { %3115 = vmatmul.mubr.msk.f32.gmra.mxu1 %vm187_vm0, %v3455_v16  ;;  %3143 = vmatprep.mubr.msk.f32.mxu0 %vm187_vm0, %v3615_v51 }
  0x5d   : > { %3117 = vmatprep.mubr.msk.f32.mxu1 %vm187_vm0, %v3461_v18 }
  0x5f   : > { %3144 = vmatmul.mubr.msk.f32.gmra.mxu0 %vm187_vm0, %v3629_v53 }
  0x60   : > { %3118 = vmatmul.mubr.msk.f32.gmra.mxu1 %vm187_vm0, %v3475_v20  ;;  %3146 = vmatprep.mubr.msk.f32.mxu0 %vm187_vm0, %v3699_v58 }
  0x61   : > { %3120 = vmatprep.mubr.msk.f32.mxu1 %vm187_vm0, %v2678_v57 }
  0x63   : > { %3147 = vmatmul.mubr.msk.f32.gmra.mxu0 %vm187_vm0, %v3710_v60 }
  0x64   : > { %3121 = vmatmul.mubr.msk.f32.gmra.mxu1 %vm187_vm0, %v2679_v59  ;;  %3177 = vmatprep.mubr.msk.f32.mxu0 %vm187_vm0, %v3438_v13 }
  0x65   : > { %3151 = vmatprep.mubr.msk.f32.mxu1 %vm187_vm0, %v3491_v26 }
  0x67   : > { %3178 = vmatmul.mubr.msk.f32.vlgmr.msra.gmra.mxu0 %vm187_vm0, %v3452_v15 }
  0x68   : > { %3152 = vmatmul.mubr.msk.f32.vlgmr.msra.gmra.mxu1 %vm187_vm0, %v3507_v30  ;;  %3228 = vmatpush3.msra.mxu0 %v2847_v56 }
  0x69   : > { %3202 = vmatpush3.msra.mxu1 %v2814_v55  ;;  %3154 = vmatprep.mubr.msk.f32.mxu1 %vm187_vm0, %v3517_v32 }
  0x6a   : > { %3180 = vmatprep.mubr.msk.f32.mxu0 %vm187_vm0, %v3458_v17 }
  0x6b   : > { %3181 = vmatmul.mubr.msk.f32.gmra.mxu0 %vm187_vm0, %v3472_v19 }
  0x6c   : > { %3155 = vmatmul.mubr.msk.f32.gmra.mxu1 %vm187_vm0, %v3532_v34  ;;  %3183 = vmatprep.mubr.msk.f32.mxu0 %vm187_vm0, %v3403_v4  ;;  %v2846_v4 = vld [vmem:[%s3399_s27 + $0xe2] sm:$0xff] }
  0x6d   : > { %3157 = vmatprep.mubr.msk.f32.mxu1 %vm187_vm0, %v3538_v36 }
  0x6f   : > { %3184 = vmatmul.mubr.msk.f32.gmra.mxu0 %vm187_vm0, %v3410_v6 }
  0x70   : > { %3158 = vmatmul.mubr.msk.f32.gmra.mxu1 %vm187_vm0, %v3552_v38  ;;  %3186 = vmatprep.mubr.msk.f32.mxu0 %vm187_vm0, %v3416_v8 }
  0x71   : > { %3160 = vmatprep.mubr.msk.f32.mxu1 %vm187_vm0, %v3558_v40 }
  0x73   : > { %3187 = vmatmul.mubr.msk.f32.gmra.mxu0 %vm187_vm0, %v3431_v12 }
  0x74   : > { %3161 = vmatmul.mubr.msk.f32.gmra.mxu1 %vm187_vm0, %v3572_v42  ;;  %3189 = vmatprep.mubr.msk.f32.mxu0 %vm187_vm0, %v3441_v14 }
  0x75   : > { %3163 = vmatprep.mubr.msk.f32.mxu1 %vm187_vm0, %v3578_v44 }
  0x77   : > { %3190 = vmatmul.mubr.msk.f32.gmra.mxu0 %vm187_vm0, %v3455_v16 }
  0x78   : > { %3164 = vmatmul.mubr.msk.f32.gmra.mxu1 %vm187_vm0, %v3592_v46  ;;  %3192 = vmatprep.mubr.msk.f32.mxu0 %vm187_vm0, %v3461_v18 }
  0x79   : > { %3166 = vmatprep.mubr.msk.f32.mxu1 %vm187_vm0, %v3598_v48 }
  0x7b   : > { %3193 = vmatmul.mubr.msk.f32.gmra.mxu0 %vm187_vm0, %v3475_v20 }
  0x7c   : > { %3167 = vmatmul.mubr.msk.f32.gmra.mxu1 %vm187_vm0, %v3612_v50  ;;  %3195 = vmatprep.mubr.msk.f32.mxu0 %vm187_vm0, %v2678_v57 }
  0x7d   : > { %3169 = vmatprep.mubr.msk.f32.mxu1 %vm187_vm0, %v3618_v52 }
  0x7f   : > { %3196 = vmatmul.mubr.msk.f32.gmra.mxu0 %vm187_vm0, %v2679_v59 }
  0x80   : > { %3170 = vmatmul.mubr.msk.f32.gmra.mxu1 %vm187_vm0, %v3632_v54  ;;  %3198 = vmatprep.mubr.msk.f32.mxu0 %vm187_vm0, %v2779_v62 }
  0x81   : > { %3172 = vmatprep.mubr.msk.f32.mxu1 %vm187_vm0, %v2744_v61 }
  0x83   : > { %3199 = vmatmul.mubr.msk.f32.gmra.mxu0 %vm187_vm0, %v2780_v0 }
  0x84   : > { %3173 = vmatmul.mubr.msk.f32.gmra.mxu1 %vm187_vm0, %v2745_v63  ;;  %3229 = vmatprep.mubr.msk.f32.mxu0 %vm187_vm0, %v3517_v32 }
  0x85   : > { %3203 = vmatprep.mubr.msk.f32.mxu1 %vm187_vm0, %v3514_v31 }
  0x87   : > { %3230 = vmatmul.mubr.msk.f32.vlgmr.msra.gmra.mxu0 %vm187_vm0, %v3532_v34 }
  0x88   : > { %3204 = vmatmul.mubr.msk.f32.vlgmr.msra.gmra.mxu1 %vm187_vm0, %v3529_v33  ;;  %3232 = vmatprep.mubr.msk.f32.mxu0 %vm187_vm0, %v3538_v36 }
  0x89   : > { %3206 = vmatprep.mubr.msk.f32.mxu1 %vm187_vm0, %v3535_v35 }
  0x8b   : > { %3233 = vmatmul.mubr.msk.f32.gmra.mxu0 %vm187_vm0, %v3552_v38 }
  0x8c   : > { %3207 = vmatmul.mubr.msk.f32.gmra.mxu1 %vm187_vm0, %v3549_v37  ;;  %3235 = vmatprep.mubr.msk.f32.mxu0 %vm187_vm0, %v3558_v40 }
  0x8d   : > { %3209 = vmatprep.mubr.msk.f32.mxu1 %vm187_vm0, %v3555_v39 }
  0x8f   : > { %3236 = vmatmul.mubr.msk.f32.gmra.mxu0 %vm187_vm0, %v3572_v42 }
  0x90   : > { %3210 = vmatmul.mubr.msk.f32.gmra.mxu1 %vm187_vm0, %v3569_v41  ;;  %3238 = vmatprep.mubr.msk.f32.mxu0 %vm187_vm0, %v3578_v44 }
  0x91   : > { %3212 = vmatprep.mubr.msk.f32.mxu1 %vm187_vm0, %v3575_v43 }
  0x93   : > { %3239 = vmatmul.mubr.msk.f32.gmra.mxu0 %vm187_vm0, %v3592_v46 }
  0x94   : > { %3213 = vmatmul.mubr.msk.f32.gmra.mxu1 %vm187_vm0, %v3589_v45  ;;  %3241 = vmatprep.mubr.msk.f32.mxu0 %vm187_vm0, %v3598_v48 }
  0x95   : > { %3215 = vmatprep.mubr.msk.f32.mxu1 %vm187_vm0, %v3595_v47 }
  0x97   : > { %3242 = vmatmul.mubr.msk.f32.gmra.mxu0 %vm187_vm0, %v3612_v50 }
  0x98   : > { %3216 = vmatmul.mubr.msk.f32.gmra.mxu1 %vm187_vm0, %v3609_v49  ;;  %3244 = vmatprep.mubr.msk.f32.mxu0 %vm187_vm0, %v3618_v52 }
  0x99   : > { %3218 = vmatprep.mubr.msk.f32.mxu1 %vm187_vm0, %v3615_v51 }
  0x9b   : > { %3245 = vmatmul.mubr.msk.f32.gmra.mxu0 %vm187_vm0, %v3632_v54 }
  0x9c   : > { %3219 = vmatmul.mubr.msk.f32.gmra.mxu1 %vm187_vm0, %v3629_v53  ;;  %3247 = vmatprep.mubr.msk.f32.mxu0 %vm187_vm0, %v2744_v61 }
  0x9d   : > { %3221 = vmatprep.mubr.msk.f32.mxu1 %vm187_vm0, %v3699_v58 }
  0x9f   : > { %3248 = vmatmul.mubr.msk.f32.gmra.mxu0 %vm187_vm0, %v2745_v63 }
  0xa0   : > { %3222 = vmatmul.mubr.msk.f32.gmra.mxu1 %vm187_vm0, %v3710_v60  ;;  %3250 = vmatprep.mubr.msk.f32.mxu0 %vm187_vm0, %v2845_v2 }
  0xa1   : > { %3224 = vmatprep.mubr.msk.f32.mxu1 %vm187_vm0, %v2812_v1 }
  0xa3   : > { %3251 = vmatmul.mubr.msk.f32.gmra.mxu0 %vm187_vm0, %v2846_v4 }
  0xa4   : > { %3225 = vmatmul.mubr.msk.f32.gmra.mxu1 %vm187_vm0, %v2813_v3 }
  0xd7   : > { %v3023_v5 = vpop.f32.mrf.mxu0 }
  0xd8   : > { %v3035_v6 = vpop.f32.mrf.mxu1 }
  0xd9   : > { %v302_v7 = vpop.f32.mrf.mxu0 }
  0xda   : > { %v342_v8 = vpop.f32.mrf.mxu1 }
  0xdb   : > { %v3026_v9 = vpop.f32.mrf.mxu0 }
  0xdc   : > { %v3038_v10 = vpop.f32.mrf.mxu1 }
  0xdd   : > { %v312_v11 = vpop.f32.mrf.mxu0 }
  0xde   : > { %v352_v12 = vpop.f32.mrf.mxu1 }
  0xdf   : > { %v3029_v13 = vpop.f32.mrf.mxu0 }
  0xe0   : > { %v3041_v14 = vpop.f32.mrf.mxu1 }
  0xe1   : > { %v322_v15 = vpop.f32.mrf.mxu0 }
  0xe2   : > { %v362_v16 = vpop.f32.mrf.mxu1 }
  0xe3   : > { %v3032_v17 = vpop.f32.mrf.mxu0 }
  0xe4   : > { %v3044_v18 = vpop.f32.mrf.mxu1 }
  0xe5   : > { %v332_v19 = vpop.f32.mrf.mxu0 }
  0xe6   : > { %v3839_v20 = vpop.f32.mrf.mxu1 }
  0xe7   : > { %v3075_v22 = vpop.f32.mrf.mxu0 }
  0xe8   : > { %v3049_v21 = vpop.f32.mrf.mxu1 }
  0xe9   : > { %v625_v23 = vadd.f32 %v3049_v21, %v3023_v5  ;;  %v788_v25 = vpop.f32.mrf.mxu0 }
  0xea   : > { %v529_v24 = vpop.f32.mrf.mxu1 }
  0xeb   : > { %v3841_v26 = vadd.f32 %v3075_v22, %v625_v23  ;;  %v624_v27 = vadd.f32 %v529_v24, %v302_v7  ;;  %v3078_v29 = vpop.f32.mrf.mxu0 }
  0xec   : > { %v3052_v28 = vpop.f32.mrf.mxu1 }
  0xed   : > { %v3843_v30 = vadd.f32 %v788_v25, %v624_v27  ;;  %v627_v31 = vadd.f32 %v3052_v28, %v3026_v9  ;;  %v798_v33 = vpop.f32.mrf.mxu0 }
  0xee   : > { %v539_v32 = vpop.f32.mrf.mxu1 }
  0xef   : > { %v3845_v34 = vadd.f32 %v3078_v29, %v627_v31  ;;  %v626_v35 = vadd.f32 %v539_v32, %v312_v11  ;;  %v3081_v37 = vpop.f32.mrf.mxu0 }
  0xf0   : > { %v3055_v36 = vpop.f32.mrf.mxu1 }
  0xf1   : > { %v3847_v38 = vadd.f32 %v798_v33, %v626_v35  ;;  %v629_v39 = vadd.f32 %v3055_v36, %v3029_v13  ;;  %v808_v41 = vpop.f32.mrf.mxu0 }
  0xf2   : > { %v549_v40 = vpop.f32.mrf.mxu1 }
  0xf3   : > { %v3849_v42 = vadd.f32 %v3081_v37, %v629_v39  ;;  %v628_v43 = vadd.f32 %v549_v40, %v322_v15  ;;  %v3084_v45 = vpop.f32.mrf.mxu0 }
  0xf4   : > { %v3058_v44 = vpop.f32.mrf.mxu1 }
  0xf5   : > { %v3851_v46 = vadd.f32 %v808_v41, %v628_v43  ;;  %v631_v47 = vadd.f32 %v3058_v44, %v3032_v17  ;;  %v818_v49 = vpop.f32.mrf.mxu0 }
  0xf6   : > { %v559_v48 = vpop.f32.mrf.mxu1 }
  0xf7   : > { %v3853_v50 = vadd.f32 %v3084_v45, %v631_v47  ;;  %v630_v51 = vadd.f32 %v559_v48, %v332_v19  ;;  %v3087_v53 = vpop.f32.mrf.mxu0 }
  0xf8   : > { %v3061_v52 = vpop.f32.mrf.mxu1 }
  0xf9   : > { %v3855_v54 = vadd.f32 %v818_v49, %v630_v51  ;;  %v633_v55 = vadd.f32 %v3061_v52, %v3035_v6  ;;  %v828_v57 = vpop.f32.mrf.mxu0 }
  0xfa   : > { %v569_v56 = vpop.f32.mrf.mxu1 }
  0xfb   : > { %v3857_v58 = vadd.f32 %v3087_v53, %v633_v55  ;;  %v632_v59 = vadd.f32 %v569_v56, %v342_v8  ;;  %v3090_v61 = vpop.f32.mrf.mxu0 }
  0xfc   : > { %v3064_v60 = vpop.f32.mrf.mxu1 }
  0xfd   : > { %v3859_v62 = vadd.f32 %v828_v57, %v632_v59  ;;  %v635_v63 = vadd.f32 %v3064_v60, %v3038_v10  ;;  %v838_v1 = vpop.f32.mrf.mxu0 }
  0xfe   : > { %v579_v0 = vpop.f32.mrf.mxu1 }
  0xff   : > { %v3861_v2 = vadd.f32 %v3090_v61, %v635_v63  ;;  %v634_v3 = vadd.f32 %v579_v0, %v352_v12  ;;  %v3093_v5 = vpop.f32.mrf.mxu0 }
 0x100   : > { %v3067_v4 = vpop.f32.mrf.mxu1 }
 0x101   : > { %v3863_v7 = vadd.f32 %v838_v1, %v634_v3  ;;  %v637_v6 = vadd.f32 %v3067_v4, %v3041_v14  ;;  %v848_v11 = vpop.f32.mrf.mxu0 }
 0x102   : > { %v589_v9 = vpop.f32.mrf.mxu1 }
 0x103   : > { %v3865_v13 = vadd.f32 %v3093_v5, %v637_v6  ;;  %v636_v8 = vadd.f32 %v589_v9, %v362_v16  ;;  %v3096_v17 = vpop.f32.mrf.mxu0 }
 0x104   : > { %v3070_v15 = vpop.f32.mrf.mxu1 }
 0x105   : > { %v3867_v19 = vadd.f32 %v848_v11, %v636_v8  ;;  %v639_v10 = vadd.f32 %v3070_v15, %v3044_v18  ;;  %v858_v22 = vpop.f32.mrf.mxu0 }
 0x106   : > { %v599_v21 = vpop.f32.mrf.mxu1 }
 0x107   : > { %4090 = vst [vmem:[#allocation3_spill] sm:$0xff] %v3867_v19  ;;  %v3869_v23 = vadd.f32 %v3096_v17, %v639_v10  ;;  %v638_v12 = vadd.f32 %v599_v21, %v3839_v20  ;;  %v3872_v25 = vpop.f32.mrf.mxu0 }
 0x108   : > { %v3101_v24 = vpop.f32.mrf.mxu1 }
 0x109   : > { %4091 = vst [vmem:[#allocation4_spill] sm:$0xff] %v3869_v23  ;;  %v3874_v14 = vadd.f32 %v858_v22, %v638_v12  ;;  %v3876_v28 = vpop.f32.mrf.mxu0  ;;  %v1146_v23 = vadd.f32 %v3101_v24, %v3841_v26 }
 0x10a   : > { %v1050_v27 = vpop.f32.mrf.mxu1 }
 0x10b   : > { %4092 = vst [vmem:[#allocation5_spill] sm:$0xff] %v3874_v14  ;;  %v3878_v29 = vpop.f32.mrf.mxu0  ;;  %v1145_v19 = vadd.f32 %v1050_v27, %v3843_v30 }
 0x10c   : > { %v3104_v16 = vpop.f32.mrf.mxu1 }
 0x10d   : > { %v3882_v18 = vpop.f32.mrf.mxu0  ;;  %v1404_v26 = vadd.f32 %v3876_v28, %v1145_v19 }
 0x10e   : > { %v3880_v31 = vpop.f32.mrf.mxu1 }
 0x10f   : > { %v3886_v33 = vpop.f32.mrf.mxu0  ;;  %v1147_v24 = vadd.f32 %v3880_v31, %v3847_v38 }
 0x110   : > { %v3884_v32 = vpop.f32.mrf.mxu1 }
 0x111   : > { %v3890_v35 = vpop.f32.mrf.mxu0  ;;  %v1406_v38 = vadd.f32 %v3882_v18, %v1147_v24 }
 0x112   : > { %v3888_v20 = vpop.f32.mrf.mxu1 }
 0x113   : > { %v3894_v37 = vpop.f32.mrf.mxu0 }
 0x114   : > { %v3892_v36 = vpop.f32.mrf.mxu1 }
 0x115   : > { %v3898_v40 = vpop.f32.mrf.mxu0  ;;  %v1152_v31 = vadd.f32 %v3892_v36, %v3853_v50 }
 0x116   : > { %v3896_v39 = vpop.f32.mrf.mxu1 }
 0x117   : > { %v3902_v43 = vpop.f32.mrf.mxu0 }
 0x118   : > { %v3900_v41 = vpop.f32.mrf.mxu1 }
 0x119   : > { %v3906_v45 = vpop.f32.mrf.mxu0 }
 0x11a   : > { %v3904_v44 = vpop.f32.mrf.mxu1 }
 0x11b   : > { %v3910_v48 = vpop.f32.mrf.mxu0 }
 0x11c   : > { %v3908_v47 = vpop.f32.mrf.mxu1 }
 0x11d   : > { %v3914_v51 = vpop.f32.mrf.mxu0 }
 0x11e   : > { %v3912_v49 = vpop.f32.mrf.mxu1  ;;  %4093 = vst [vmem:[#allocation6_spill] sm:$0xff] %v3914_v51 }
 0x11f   : > { %v3918_v53 = vpop.f32.mrf.mxu0 }
 0x120   : > { %v3916_v52 = vpop.f32.mrf.mxu1  ;;  %4094 = vst [vmem:[#allocation7_spill] sm:$0xff] %v3918_v53 }
 0x121   : > { %v3922_v56 = vpop.f32.mrf.mxu0 }
 0x122   : > { %v3920_v55 = vpop.f32.mrf.mxu1  ;;  %4096 = vst [vmem:[#allocation9_spill] sm:$0xff] %v3922_v56 }
 0x123   : > { %4095 = vst [vmem:[#allocation8_spill] sm:$0xff] %v3920_v55  ;;  %v3926_v59 = vpop.f32.mrf.mxu0 }
 0x124   : > { %v3924_v57 = vpop.f32.mrf.mxu1  ;;  %4098 = vst [vmem:[#allocation11_spill] sm:$0xff] %v3926_v59 }
 0x125   : > { %4097 = vst [vmem:[#allocation10_spill] sm:$0xff] %v3924_v57  ;;  %v3930_v61 = vpop.f32.mrf.mxu0 }
 0x126   : > { %v3928_v60 = vpop.f32.mrf.mxu1  ;;  %4100 = vst [vmem:[#allocation13_spill] sm:$0xff] %v3930_v61 }
 0x127   : > { %4099 = vst [vmem:[#allocation12_spill] sm:$0xff] %v3928_v60  ;;  %v3179_v0 = vpop.f32.mrf.mxu0 }
 0x128   : > { %v3153_v63 = vpop.f32.mrf.mxu1 }
 0x129   : > { %v1830_v3 = vpop.f32.mrf.mxu0 }
 0x12a   : > { %v1568_v1 = vpop.f32.mrf.mxu1 }
 0x12b   : > { %v3182_v5 = vpop.f32.mrf.mxu0 }
 0x12c   : > { %v3156_v4 = vpop.f32.mrf.mxu1 }
 0x12d   : > { %v3932_v9 = vpop.f32.mrf.mxu0 }
 0x12e   : > { %v1578_v6 = vpop.f32.mrf.mxu1 }
 0x12f   : > { %v3934_v8 = vpop.f32.mrf.mxu0 }
 0x130   : > { %v3159_v11 = vpop.f32.mrf.mxu1 }
 0x131   : > { %v3938_v17 = vpop.f32.mrf.mxu0 }
 0x132   : > { %v3936_v15 = vpop.f32.mrf.mxu1 }
 0x133   : > { %v3942_v21 = vpop.f32.mrf.mxu0 }
 0x134   : > { %v3940_v10 = vpop.f32.mrf.mxu1 }
 0x135   : > { %v3946_v12 = vpop.f32.mrf.mxu0 }
 0x136   : > { %v3944_v22 = vpop.f32.mrf.mxu1 }
 0x137   : > { %v3950_v59 = vpop.f32.mrf.mxu0 }
 0x138   : > { %v3948_v61 = vpop.f32.mrf.mxu1  ;;  %4101 = vst [vmem:[#allocation14_spill] sm:$0xff] %v3950_v59 }
 0x139   : > { %v3955_v14 = vpop.f32.mrf.mxu0 }
 0x13a   : > { %v3953_v60 = vpop.f32.mrf.mxu1  ;;  %4103 = vst [vmem:[#allocation16_spill] sm:$0xff] %v3955_v14  ;;  %v1405_v14 = vadd.f32 %v3872_v25, %v1146_v23  ;;  %v1663_v25 = vadd.f32 %v1568_v1, %v1404_v26 }
 0x13b   : > { %4102 = vst [vmem:[#allocation15_spill] sm:$0xff] %v3953_v60  ;;  %v3959_v57 = vpop.f32.mrf.mxu0 }
 0x13c   : > { %v3957_v56 = vpop.f32.mrf.mxu1  ;;  %4105 = vst [vmem:[#allocation18_spill] sm:$0xff] %v3959_v57  ;;  %v1664_v30 = vadd.f32 %v3153_v63, %v1405_v14  ;;  %v1665_v63 = vadd.f32 %v1578_v6, %v1406_v38 }
 0x13d   : > { %4104 = vst [vmem:[#allocation17_spill] sm:$0xff] %v3957_v56  ;;  %v3964_v55 = vpop.f32.mrf.mxu0  ;;  %v1148_v56 = vadd.f32 %v3104_v16, %v3845_v34  ;;  %v1150_v34 = vadd.f32 %v3884_v32, %v3849_v42  ;;  %v1149_v16 = vadd.f32 %v3888_v20, %v3851_v46  ;;  %v1925_v32 = vadd.f32 %v1830_v3, %v1663_v25 }
 0x13e   : > { %v3962_v53 = vpop.f32.mrf.mxu1  ;;  %4106 = vst [vmem:[#allocation19_spill] sm:$0xff] %v3964_v55  ;;  %v1926_v14 = vadd.f32 %v3179_v0, %v1664_v30  ;;  %v1151_v20 = vadd.f32 %v3896_v39, %v3855_v54  ;;  %v1411_v3 = vadd.f32 %v3894_v37, %v1152_v31  ;;  %v1927_v39 = vadd.f32 %v3932_v9, %v1665_v63  ;;  %v4109_v63 = vld [vmem:[#allocation6_spill] sm:$0xff] }
 0x13f   : > { %v3969_v51 = vpop.f32.mrf.mxu0  ;;  %v1407_v23 = vadd.f32 %v3878_v29, %v1148_v56  ;;  %v1409_v42 = vadd.f32 %v3886_v33, %v1150_v34  ;;  %v1408_v46 = vadd.f32 %v3890_v35, %v1149_v16  ;;  %v1154_v35 = vadd.f32 %v3900_v41, %v3857_v58 }
 0x140   : > { %v3967_v59 = vpop.f32.mrf.mxu1  ;;  %v1670_v58 = vadd.f32 %v3940_v10, %v1411_v3  ;;  %v1156_v25 = vadd.f32 %v3908_v47, %v3861_v2  ;;  %v4115_v3 = vld [vmem:[#allocation4_spill] sm:$0xff] }
 0x141   : > { %v3976_v60 = vpop.f32.mrf.mxu0  ;;  %v1666_v28 = vadd.f32 %v3156_v4, %v1407_v23  ;;  %v1668_v0 = vadd.f32 %v3159_v11, %v1409_v42  ;;  %v1667_v26 = vadd.f32 %v3936_v15, %v1408_v46  ;;  %v1153_v11 = vadd.f32 %v3904_v44, %v3859_v62  ;;  %v4111_v46 = vld [vmem:[#allocation8_spill] sm:$0xff] }
 0x142   : > { %v3974_v57 = vpop.f32.mrf.mxu1  ;;  %4107 = vst [vmem:[#allocation20_spill] sm:$0xff] %v3976_v60  ;;  %v1413_v15 = vadd.f32 %v3902_v43, %v1154_v35  ;;  %v1932_v31 = vadd.f32 %v3942_v21, %v1670_v58  ;;  %v4116_v35 = vld [vmem:[#allocation10_spill] sm:$0xff]  ;;  %v4120_v58 = vld [vmem:[#allocation12_spill] sm:$0xff] }
 0x143   : > { %v3983_v55 = vpop.f32.mrf.mxu0  ;;  %v1928_v36 = vadd.f32 %v3182_v5, %v1666_v28  ;;  %v1410_v5 = vadd.f32 %v3898_v40, %v1151_v20  ;;  %v1930_v34 = vadd.f32 %v3934_v8, %v1668_v0  ;;  %v1929_v38 = vadd.f32 %v3938_v17, %v1667_v26  ;;  %v4117_v26 = vld [vmem:[#allocation16_spill] sm:$0xff] }
 0x144   : > { %v3981_v27 = vpop.f32.mrf.mxu1  ;;  %v1412_v10 = vadd.f32 %v3906_v45, %v1153_v11  ;;  %v1672_v2 = vadd.f32 %v3948_v61, %v1413_v15 }
 0x145   : > { %v3992_v19 = vpop.f32.mrf.mxu0  ;;  %v1669_v62 = vadd.f32 %v3944_v22, %v1410_v5  ;;  %v1415_v22 = vadd.f32 %v3910_v48, %v1156_v25  ;;  %v4121_v25 = vld [vmem:[#allocation18_spill] sm:$0xff] }
 0x146   : > { %v3990_v60 = vpop.f32.mrf.mxu1 }
 0x147   : > { %v3231_v56 = vpop.f32.mrf.mxu0  ;;  %v1931_v42 = vadd.f32 %v3946_v12, %v1669_v62 }
 0x148   : > { %v3205_v29 = vpop.f32.mrf.mxu1 }
 0x149   : > { %v2185_v1 = vadd.f32 %v3205_v29, %v1926_v14  ;;  %v2348_v50 = vpop.f32.mrf.mxu0  ;;  %v1155_v14 = vadd.f32 %v3912_v49, %v3863_v7  ;;  %v1158_v29 = vadd.f32 %v3916_v52, %v3865_v13  ;;  %v4108_v7 = vld [vmem:[#allocation15_spill] sm:$0xff]  ;;  %v4113_v13 = vld [vmem:[#allocation17_spill] sm:$0xff] }
 0x14a   : > { %v2089_v18 = vpop.f32.mrf.mxu1  ;;  %v1671_v49 = vadd.f32 %v4108_v7, %v1412_v10  ;;  %v1674_v52 = vadd.f32 %v4113_v13, %v1415_v22 }
 0x14b   : > { %v2444_v4 = vadd.f32 %v3231_v56, %v2185_v1  ;;  %v2184_v33 = vadd.f32 %v2089_v18, %v1925_v32  ;;  %v3234_v54 = vpop.f32.mrf.mxu0  ;;  %v1414_v61 = vadd.f32 %v4109_v63, %v1155_v14  ;;  %v4110_v1 = vld [vmem:[#allocation3_spill] sm:$0xff] }
 0x14c   : > { %v3208_v6 = vpop.f32.mrf.mxu1  ;;  %v1157_v20 = vadd.f32 %v4111_v46, %v4110_v1  ;;  %v4123_v14 = vld [vmem:[#allocation19_spill] sm:$0xff] }
 0x14d   : > { %2492 = vst [vmem:[%s4004_s23 + $0x8] sm:$0xff] %v2444_v4  ;;  %v2443_v24 = vadd.f32 %v2348_v50, %v2184_v33  ;;  %v2187_v30 = vadd.f32 %v3208_v6, %v1928_v36  ;;  %v2358_v37 = vpop.f32.mrf.mxu0  ;;  %v4112_v50 = vld [vmem:[#allocation14_spill] sm:$0xff]  ;;  %v4114_v4 = vld [vmem:[#allocation7_spill] sm:$0xff]  ;;  %v1160_v6 = vadd.f32 %v4116_v35, %v4115_v3 }
 0x14e   : > { %v2099_v23 = vpop.f32.mrf.mxu1  ;;  %v1934_v36 = vadd.f32 %v4112_v50, %v1672_v2  ;;  %v1417_v33 = vadd.f32 %v4114_v4, %v1158_v29 }
 0x14f   : > { %2491 = vst [vmem:[%s4004_s23] sm:$0xff] %v2443_v24  ;;  %v2446_v41 = vadd.f32 %v3234_v54, %v2187_v30  ;;  %v2186_v9 = vadd.f32 %v2099_v23, %v1927_v39  ;;  %v3237_v40 = vpop.f32.mrf.mxu0  ;;  %v1933_v24 = vadd.f32 %v4117_v26, %v1671_v49  ;;  %v1673_v30 = vadd.f32 %v3962_v53, %v1414_v61  ;;  %v4118_v23 = vld [vmem:[#allocation9_spill] sm:$0xff]  ;;  %v4122_v53 = vld [vmem:[#allocation11_spill] sm:$0xff] }
 0x150   : > { %v3211_v16 = vpop.f32.mrf.mxu1 }
 0x151   : > { %2494 = vst [vmem:[%s4004_s23 + $0x18] sm:$0xff] %v2446_v41  ;;  %v2445_v44 = vadd.f32 %v2358_v37, %v2186_v9  ;;  %v2189_v8 = vadd.f32 %v3211_v16, %v1930_v34  ;;  %v2368_v43 = vpop.f32.mrf.mxu0  ;;  %v1416_v37 = vadd.f32 %v4118_v23, %v1157_v20  ;;  %v4119_v34 = vld [vmem:[#allocation5_spill] sm:$0xff]  ;;  %v1936_v16 = vadd.f32 %v4121_v25, %v1674_v52 }
 0x152   : > { %v2109_v28 = vpop.f32.mrf.mxu1  ;;  %v1159_v41 = vadd.f32 %v4120_v58, %v4119_v34 }
 0x153   : > { %2493 = vst [vmem:[%s4004_s23 + $0x10] sm:$0xff] %v2445_v44  ;;  %v2448_v47 = vadd.f32 %v3237_v40, %v2189_v8  ;;  %v2188_v17 = vadd.f32 %v2109_v28, %v1929_v38  ;;  %v3240_v45 = vpop.f32.mrf.mxu0  ;;  %v1676_v40 = vadd.f32 %v3967_v59, %v1417_v33  ;;  %v1419_v44 = vadd.f32 %v4122_v53, %v1160_v6 }
 0x154   : > { %v3214_v56 = vpop.f32.mrf.mxu1  ;;  %v1935_v28 = vadd.f32 %v4123_v14, %v1673_v30 }
 0x155   : > { %2496 = vst [vmem:[%s4004_s23 + $0x28] sm:$0xff] %v2448_v47  ;;  %v2447_v32 = vadd.f32 %v2368_v43, %v2188_v17  ;;  %v2191_v21 = vadd.f32 %v3214_v56, %v1932_v31  ;;  %v2378_v48 = vpop.f32.mrf.mxu0  ;;  %v1675_v43 = vadd.f32 %v3974_v57, %v1416_v37  ;;  %v4124_v47 = vld [vmem:[#allocation13_spill] sm:$0xff]  ;;  %v1938_v29 = vadd.f32 %v3969_v51, %v1676_v40  ;;  %v4125_v57 = vld [vmem:[#allocation20_spill] sm:$0xff] }
 0x156   : > { %v2119_v18 = vpop.f32.mrf.mxu1  ;;  %v1418_v17 = vadd.f32 %v4124_v47, %v1159_v41  ;;  %v1678_v56 = vadd.f32 %v3981_v27, %v1419_v44 }
 0x157   : > { %2495 = vst [vmem:[%s4004_s23 + $0x20] sm:$0xff] %v2447_v32  ;;  %v2450_v0 = vadd.f32 %v3240_v45, %v2191_v21  ;;  %v2190_v12 = vadd.f32 %v2119_v18, %v1931_v42  ;;  %v3243_v39 = vpop.f32.mrf.mxu0  ;;  %v1937_v32 = vadd.f32 %v4125_v57, %v1675_v43 }
 0x158   : > { %v3217_v54 = vpop.f32.mrf.mxu1  ;;  %v1677_v21 = vadd.f32 %v3990_v60, %v1418_v17  ;;  %v1940_v51 = vadd.f32 %v3983_v55, %v1678_v56 }
 0x159   : > { %2498 = vst [vmem:[%s4004_s23 + $0x38] sm:$0xff] %v2450_v0  ;;  %v2449_v5 = vadd.f32 %v2378_v48, %v2190_v12  ;;  %v2193_v11 = vadd.f32 %v3217_v54, %v1934_v36  ;;  %v2388_v15 = vpop.f32.mrf.mxu0 }
 0x15a   : > { %v2129_v9 = vpop.f32.mrf.mxu1  ;;  %v1939_v50 = vadd.f32 %v3992_v19, %v1677_v21 }
 0x15b   : > { %2497 = vst [vmem:[%s4004_s23 + $0x30] sm:$0xff] %v2449_v5  ;;  %v2452_v38 = vadd.f32 %v3243_v39, %v2193_v11  ;;  %v2192_v62 = vadd.f32 %v2129_v9, %v1933_v24  ;;  %v3246_v10 = vpop.f32.mrf.mxu0 }
 0x15c   : > { %v3220_v8 = vpop.f32.mrf.mxu1 }
 0x15d   : > { %2500 = vst [vmem:[%s4004_s23 + $0x48] sm:$0xff] %v2452_v38  ;;  %v2451_v31 = vadd.f32 %v2388_v15, %v2192_v62  ;;  %v2195_v2 = vadd.f32 %v3220_v8, %v1936_v16  ;;  %v2398_v59 = vpop.f32.mrf.mxu0 }
 0x15e   : > { %v2139_v22 = vpop.f32.mrf.mxu1 }
 0x15f   : > { %2499 = vst [vmem:[%s4004_s23 + $0x40] sm:$0xff] %v2451_v31  ;;  %v2454_v45 = vadd.f32 %v3246_v10, %v2195_v2  ;;  %v2194_v42 = vadd.f32 %v2139_v22, %v1935_v28  ;;  %v3249_v49 = vpop.f32.mrf.mxu0 }
 0x160   : > { %v3223_v7 = vpop.f32.mrf.mxu1 }
 0x161   : > { %2502 = vst [vmem:[%s4004_s23 + $0x58] sm:$0xff] %v2454_v45  ;;  %v2453_v63 = vadd.f32 %v2398_v59, %v2194_v42  ;;  %v2197_v61 = vadd.f32 %v3223_v7, %v1938_v29  ;;  %v2408_v46 = vpop.f32.mrf.mxu0 }
 0x162   : > { %v2149_v1 = vpop.f32.mrf.mxu1 }
 0x163   : > { %2501 = vst [vmem:[%s4004_s23 + $0x50] sm:$0xff] %v2453_v63  ;;  %v2456_v27 = vadd.f32 %v3249_v49, %v2197_v61  ;;  %v2196_v20 = vadd.f32 %v2149_v1, %v1937_v32  ;;  %v3252_v48 = vpop.f32.mrf.mxu0 }
 0x164   : > { %v3226_v18 = vpop.f32.mrf.mxu1 }
 0x165   : > { %2504 = vst [vmem:[%s4004_s23 + $0x68] sm:$0xff] %v2456_v27  ;;  %v2455_v36 = vadd.f32 %v2408_v46, %v2196_v20  ;;  %v2199_v60 = vadd.f32 %v3226_v18, %v1940_v51  ;;  %v2418_v12 = vpop.f32.mrf.mxu0 }
 0x166   : > { %v2159_v13 = vpop.f32.mrf.mxu1 }
 0x167   : > { %2503 = vst [vmem:[%s4004_s23 + $0x60] sm:$0xff] %v2455_v36  ;;  %v2458_v52 = vadd.f32 %v3252_v48, %v2199_v60  ;;  %v2198_v0 = vadd.f32 %v2159_v13, %v1939_v50 }
 0x169   : > { %2506 = vst [vmem:[%s4004_s23 + $0x78] sm:$0xff] %v2458_v52  ;;  %v2457_v4 = vadd.f32 %v2418_v12, %v2198_v0 }
 0x16b   : > { %2505 = vst [vmem:[%s4004_s23 + $0x70] sm:$0xff] %v2457_v4 }
 0x16c PF: > { %s12_s13 = sadd.s32 1, %s3334_s13   ;;  %s4126_s9 = smov %s3326_s11 }
 0x16d   : > { %p9_p7 = scmp.ge.s32.totalorder %s12_s13, 6   ;;  %s4127_s10 = smov %s3330_s12 }
 0x16e   : > { %s4128_s11 = smov %s4131_s14  ;;  %s4129_s12 = smov %s4135_s15 }
 0x16f   :  { %11 = sbr.rel (!%p9_p7) target bundleno = 3 (0x3), region = 69 }

</bundles_post_ra>
